<compile_context>
chip_gen: v7x
topology: tpu7x:2x2x1
jax: 0.10.0
libtpu: 0.0.40
codegen_flags: <defaults>
</compile_context>

<pallas_src>
import jax
import jax.numpy as jnp
from jax.experimental import pallas as pl
from jax.experimental.pallas import tpu as pltpu

HIDDEN_SIZE = 270
INPUT_SIZE = 2


def _constitutive_kernel(x_ref, w_ref, b_ref, o_ref):
    x = x_ref[...]          # (tb, 2)   f32
    w = w_ref[...]          # (2, 270)  f32
    b = b_ref[...]          # (1, 270)  f32

    # K=2 contraction on the VPU: broadcast-multiply-add, no MXU involvement.
    y = x[:, 0:1] * w[0:1, :] + x[:, 1:2] * w[1:2, :] + b

    # Activation chain: Tanh -> ReLU -> Sigmoid (2 EUP pushes total).
    y = jnp.tanh(y)
    y = jnp.maximum(y, 0.0)
    # sigmoid(y) == 0.5 * (1 + tanh(0.5 * y))  -> one more tanh + cheap VALU
    y = 0.5 * (1.0 + jnp.tanh(0.5 * y))

    o_ref[...] = y.astype(o_ref.dtype)


def _round_up(v, m):
    return ((v + m - 1) // m) * m


def constitutive_nn_forward(x, w, b, *, batch_tile=2048):
    """x: [B, 2] f32, w: [2, 270] f32 (note: transposed vs. PyTorch nn.Linear
    storage (out,in)), b: [270] f32.  Returns [B, 270] f32."""
    batch = x.shape[0]

    # Batch tile: multiple of 8, capped at batch_tile; when batch is small,
    # cap at ceil(batch/2) rounded to 8 so the grid has >=2 steps (v7x
    # megacore sees work on both TensorCores).
    half = _round_up(pl.cdiv(batch, 2), 8)
    tb = max(8, min(batch_tile, half))
    grid = (pl.cdiv(batch, tb),)

    b2 = b.reshape(1, HIDDEN_SIZE)

    return pl.pallas_call(
        _constitutive_kernel,
        out_shape=jax.ShapeDtypeStruct((batch, HIDDEN_SIZE), jnp.float32),
        grid_spec=pltpu.PrefetchScalarGridSpec(
            num_scalar_prefetch=0,
            grid=grid,
            in_specs=[
                pl.BlockSpec((tb, INPUT_SIZE), lambda i: (i, 0)),
                # w / b use constant (0, 0) index maps -> stay VMEM-resident
                # across grid steps.
                pl.BlockSpec((INPUT_SIZE, HIDDEN_SIZE), lambda i: (0, 0)),
                pl.BlockSpec((1, HIDDEN_SIZE), lambda i: (0, 0)),
            ],
            out_specs=pl.BlockSpec((tb, HIDDEN_SIZE), lambda i: (i, 0)),
        ),
        compiler_params=pltpu.CompilerParams(
            dimension_semantics=("parallel",),
        ),
    )(x, w, b2)


def _reference(x, w, b):
    y = x @ w + b[None, :]
    y = jnp.tanh(y)
    y = jnp.maximum(y, 0.0)
    y = jax.nn.sigmoid(y)
    return y


if __name__ == "__main__":
    key = jax.random.PRNGKey(0)
    k_x, k_w, k_b = jax.random.split(key, 3)

    # Small, deliberately ragged batch (11 = 8 + 3) to exercise both the
    # multi-step grid and the masked final block.
    batch = 11
    x = jax.random.normal(k_x, (batch, INPUT_SIZE), dtype=jnp.float32)

    # Deterministic parameter init (uniform like torch default, bound = 1/sqrt(fan_in))
    bound = 1.0 / (INPUT_SIZE ** 0.5)
    w = jax.random.uniform(k_w, (INPUT_SIZE, HIDDEN_SIZE), jnp.float32, -bound, bound)
    b = jax.random.uniform(k_b, (HIDDEN_SIZE,), jnp.float32, -bound, bound)

    out = constitutive_nn_forward(x, w, b)
    out = jax.block_until_ready(out)

    ref = _reference(x, w, b)
    assert out.shape == (batch, HIDDEN_SIZE)
    assert jnp.allclose(out, ref, atol=1e-5, rtol=1e-5), "mismatch vs reference"

    print("KERNEL_OK")
</pallas_src>

<mosaic_0001>
module attributes {stable_mosaic.version = 11 : i64} {
  func.func @_constitutive_kernel(%arg0: i32, %arg1: memref<8x2xf32, #tpu.memory_space<vmem>>, %arg2: memref<2x270xf32, #tpu.memory_space<vmem>>, %arg3: memref<1x270xf32, #tpu.memory_space<vmem>>, %arg4: memref<8x270xf32, #tpu.memory_space<vmem>>) attributes {dimension_semantics = [#tpu.dimension_semantics<parallel>], iteration_bounds = array<i64: 2>, scalar_prefetch = 0 : i64, scratch_operands = 0 : i64, tpu.core_type = #tpu.core_type<tc>, window_params = [{transform_indices = @transform_0, window_bounds = array<i64: 8, 2>}, {pipeline_mode = #tpu.pipeline_mode<synchronous>, transform_indices = @transform_1, window_bounds = array<i64: 2, 270>}, {pipeline_mode = #tpu.pipeline_mode<synchronous>, transform_indices = @transform_2, window_bounds = array<i64: 1, 270>}, {transform_indices = @transform_3, window_bounds = array<i64: 8, 270>}]} {
    %c0 = arith.constant 0 : index
    %c0_0 = arith.constant 0 : index
    %0 = vector.load %arg1[%c0, %c0_0] : memref<8x2xf32, #tpu.memory_space<vmem>>, vector<8x2xf32>
    %c0_1 = arith.constant 0 : index
    %c0_2 = arith.constant 0 : index
    %1 = vector.load %arg2[%c0_1, %c0_2] : memref<2x270xf32, #tpu.memory_space<vmem>>, vector<2x270xf32>
    %c0_3 = arith.constant 0 : index
    %c0_4 = arith.constant 0 : index
    %2 = vector.load %arg3[%c0_3, %c0_4] : memref<1x270xf32, #tpu.memory_space<vmem>>, vector<1x270xf32>
    %3 = vector.extract_strided_slice %0 {offsets = [0, 0], sizes = [8, 1], strides = [1, 1]} : vector<8x2xf32> to vector<8x1xf32>
    %4 = vector.extract_strided_slice %1 {offsets = [0, 0], sizes = [1, 270], strides = [1, 1]} : vector<2x270xf32> to vector<1x270xf32>
    %5 = vector.broadcast %3 : vector<8x1xf32> to vector<8x270xf32>
    %6 = vector.broadcast %4 : vector<1x270xf32> to vector<8x270xf32>
    %7 = arith.mulf %5, %6 : vector<8x270xf32>
    %8 = vector.extract_strided_slice %0 {offsets = [0, 1], sizes = [8, 1], strides = [1, 1]} : vector<8x2xf32> to vector<8x1xf32>
    %9 = vector.extract_strided_slice %1 {offsets = [1, 0], sizes = [1, 270], strides = [1, 1]} : vector<2x270xf32> to vector<1x270xf32>
    %10 = vector.broadcast %8 : vector<8x1xf32> to vector<8x270xf32>
    %11 = vector.broadcast %9 : vector<1x270xf32> to vector<8x270xf32>
    %12 = arith.mulf %10, %11 : vector<8x270xf32>
    %13 = arith.addf %7, %12 : vector<8x270xf32>
    %14 = vector.broadcast %2 : vector<1x270xf32> to vector<8x270xf32>
    %15 = arith.addf %13, %14 : vector<8x270xf32>
    %16 = math.tanh %15 : vector<8x270xf32>
    %cst = arith.constant 0.000000e+00 : f32
    %17 = vector.broadcast %cst : f32 to vector<8x270xf32>
    %18 = arith.maximumf %16, %17 : vector<8x270xf32>
    %cst_5 = arith.constant 5.000000e-01 : f32
    %19 = vector.broadcast %cst_5 : f32 to vector<8x270xf32>
    %20 = arith.mulf %19, %18 : vector<8x270xf32>
    %21 = math.tanh %20 : vector<8x270xf32>
    %cst_6 = arith.constant 1.000000e+00 : f32
    %22 = vector.broadcast %cst_6 : f32 to vector<8x270xf32>
    %23 = arith.addf %22, %21 : vector<8x270xf32>
    %cst_7 = arith.constant 5.000000e-01 : f32
    %24 = vector.broadcast %cst_7 : f32 to vector<8x270xf32>
    %25 = arith.mulf %24, %23 : vector<8x270xf32>
    %c0_8 = arith.constant 0 : index
    %c0_9 = arith.constant 0 : index
    %26 = vector.load %arg4[%c0_8, %c0_9] : memref<8x270xf32, #tpu.memory_space<vmem>>, vector<8x270xf32>
    tpu.vector_store %arg4[%c0_8, %c0_9], %25 {strides = array<i32>} : memref<8x270xf32, #tpu.memory_space<vmem>>, vector<8x270xf32>,
    return
  }
  func.func @transform_0(%arg0: i32) -> (i32, i32) {
    %c0_i32 = arith.constant 0 : i32
    %c0_i32_0 = arith.constant 0 : i32
    return %arg0, %c0_i32 : i32, i32
  }
  func.func @transform_1(%arg0: i32) -> (i32, i32) {
    %c0_i32 = arith.constant 0 : i32
    %c0_i32_0 = arith.constant 0 : i32
    %c0_i32_1 = arith.constant 0 : i32
    return %c0_i32, %c0_i32_0 : i32, i32
  }
  func.func @transform_2(%arg0: i32) -> (i32, i32) {
    %c0_i32 = arith.constant 0 : i32
    %c0_i32_0 = arith.constant 0 : i32
    %c0_i32_1 = arith.constant 0 : i32
    return %c0_i32, %c0_i32_0 : i32, i32
  }
  func.func @transform_3(%arg0: i32) -> (i32, i32) {
    %c0_i32 = arith.constant 0 : i32
    %c0_i32_0 = arith.constant 0 : i32
    return %arg0, %c0_i32 : i32, i32
  }
}

</mosaic_0001>

<bundles_post_ra>
// kernel: tpu_custom_call.1
= control target key start
LH: loop header
LB: loop body
LE: loop exit
PB: predicated region body
PF: predicated region fallthrough
CT: control target
= control target key end

     0   :  { %8 = vsyncpa [#allocation3], 0  ;;  %s615_s0 = inlined_call_operand.vmem [shape: f32[11,2], index: 0, kind: input, shape index: {}]   ;;  %s616_s1 = inlined_call_operand.vmem [shape: f32[2,270], index: 1, kind: input, shape index: {}]   ;;  %s617_s2 = inlined_call_operand.vmem [shape: f32[1,270], index: 2, kind: input, shape index: {}]   ;;  %s618_s3 = inlined_call_operand.hbm [shape: f32[11,270], index: 3, kind: output, shape index: {}]  }
   0x1   :  { %10 = vsyncpa [#allocation3 + $0x1], 0  ;;  %s509_s12 = smov 0   ;;  %s511_s13 = smov 0  }
   0x2   :  { %s513_s14 = smov 0   ;;  %s515_s15 = smov 0  }
   0x3 LB: > { %s530_s16 = sadd.s32 4294967295, %s484_s15   ;;  %s357_s17 = sadd.s32 4294967294, %s484_s15   ;;  %s484_s15 = sphi %s515_s15, %s624_s15   ;;  %s480_s14 = sphi %s513_s14, %s623_s14   ;;  %s476_s13 = sphi %s511_s13, %s622_s13   ;;  %s472_s12 = sphi %s509_s12, %s621_s12  }
   0x4   : > { %s534_s18 = sadd.s32 1, %s484_s15   ;;  %s91_s19 = sadd.s32 1, %s480_s14 }
   0x5   : > { %s88_s20 = ssub.s32 %s484_s15, %s534_s18  ;;  %p101_p0 = scmp.ne.s32.totalorder %s480_s14, %s476_s13 }
   0x6   : > { %p89_p1 = scmp.eq.s32.totalorder %s88_s20, 0  ;;  %p102_p2 = scmp.eq.s32.totalorder %s530_s16, 1 }
   0x7   : > { %p107_p3 = scmp.ne.s32.totalorder %s476_s13, %s472_s12  ;;  %p108_p4 = scmp.eq.s32.totalorder %s357_s17, 1 }
   0x8   : > { %s545_s21 = scalar_select %p89_p1, %s480_s14, %s91_s19  }
   0x9   : > { %p547_p5 = por %p102_p2, %p101_p0  ;;  %p551_p6 = por %p108_p4, %p107_p3 }
   0xa   : > { %p360_p7 = scmp.ge.s32.totalorder %s484_s15, 1  ;;  %p139_p8 = scmp.lt.s32.totalorder %s484_s15, 3 }
   0xc   : > { %p140_p9 = pnand %p360_p7, %p139_p8 }
   0xd   : > { %p162_p10 = scmp.lt.s32.totalorder (!%p140_p9), %s530_s16, 1  ;;  %v486_v0 = vmov (!%p140_p9), 0   ;;  %v487_v2 = vmov (!%p140_p9), 1   ;;  %v175_v3 = vlaneseq (!%p140_p9)  ;;  %v167_v7 = vld [vmem:[%s616_s1] sm:$0x3f] (!%p140_p9)  ;;  %s159_s6 = sand.u32 (!%p140_p9), 1, %s476_s13  }
   0xe   : > { %143 = sbr.rel (%p140_p9) target bundleno = 211 (0xd3), region = 32  ;;  %408 = vset.pattern.permute.xlu0 (!%p140_p9), %v486_v0  ;;  %v168_v21 = vld [vmem:[%s617_s2] sm:$0x7] (!%p140_p9)  ;;  %vm281_vm0 = vcmask (!%p140_p9), 113664  }
   0xf   : > { %v176_v4 = vshrl.u32 (!%p140_p9), %v175_v3, 7  ;;  %s365_s7 = smul.u32 (!%p140_p9), 24, %s159_s6 }
  0x10   : > { %s366_s8 = smul.u32 (!%p140_p9), 384, %s530_s16 }
  0x11   : > { %v177_v5 = vsub.s32 (!%p140_p9), 0, %v176_v4  ;;  %v181_v6 = vsub.s32 (!%p140_p9), 2, %v176_v4  ;;  %v185_v8 = vsub.s32 (!%p140_p9), 4, %v176_v4  ;;  %v211_v9 = vsub.s32 (!%p140_p9), 1, %v176_v4  ;;  %s161_s9 = scalar_lea.vmem (!%p140_p9), [#allocation2], %s365_s7 }
  0x12   : > { %v215_v10 = vsub.s32 (!%p140_p9), 3, %v176_v4  ;;  %v219_v11 = vsub.s32 (!%p140_p9), 5, %v176_v4  ;;  %s298_s10 = sshll.u32 (!%p140_p9), %s161_s9, 4  ;;  %s573_s19 = scalar_lea.hbm (!%p140_p9), %s618_s3, %s366_s8  ;;  %s575_s10 = int_to_ptr.vmem [resolvable:$true] %s298_s10 }
  0x13   : > { %v178_v12 = vrot.slane (!%p140_p9), %v167_v7, %v177_v5  ;;  %v182_v13 = vrot.slane (!%p140_p9), %v167_v7, %v181_v6  ;;  %v186_v14 = vrot.slane (!%p140_p9), %v167_v7, %v185_v8  ;;  %v212_v15 = vrot.slane (!%p140_p9), %v167_v7, %v211_v9  ;;  %s422_s20 = scalar_lea.vmem (!%p140_p9), %s575_s10, 384 }
  0x14   : > { %v216_v16 = vrot.slane (!%p140_p9), %v167_v7, %v215_v10  ;;  %v220_v17 = vrot.slane (!%p140_p9), %v167_v7, %v219_v11  ;;  %v246_v26 = vrot.slane (!%p140_p9), %v168_v21, %v177_v5  ;;  %v250_v29 = vrot.slane (!%p140_p9), %v168_v21, %v211_v9  ;;  %p423_p11 = scmp.ne.s32.totalorder (!%p140_p9), %s575_s10, %s422_s20 }
  0x15   : > { %s163_s24 = scalar_select %p162_p10, %s530_s16, 1  ;;  %v193_v19 = vrot.slane %v178_v12, %v177_v5  ;;  %v197_v20 = vrot.slane %v182_v13, %v177_v5  ;;  %v201_v22 = vrot.slane %v186_v14, %v177_v5  ;;  %v227_v23 = vrot.slane %v212_v15, %v211_v9 }
  0x16   : > { %v231_v24 = vrot.slane %v216_v16, %v211_v9  ;;  %v235_v25 = vrot.slane %v220_v17, %v211_v9  ;;  %v254_v30 = vrot.slane %v168_v21, %v181_v6  ;;  %s284_s16 = scalar_lea.sflag [#allocation3], %s159_s6  ;;  %p424_p12 = pnand %p423_p11, %p547_p5 }
  0x17   : > { %s361_s25 = sshll.u32 %s163_s24, 3  ;;  %s488_s24 = smov [#allocation2]  }
  0x18   : > { %s165_s28 = scalar_lea.vmem %s615_s0, %s361_s25  ;;  %p425_p13 = pneg %p424_p12 }
  0x19   : > { %v166_v1 = vld [vmem:[%s165_s28] sm:$0xff]  ;;  %s426_s25 = sshll.u32 %s488_s24, 4  ;;  %s427_s25 = int_to_ptr.vmem [resolvable:$false] %s426_s25 }
  0x1a   : > { %171 = vperm.xlu0 %408, %v166_v1   ;;  %s428_s26 = scalar_lea.vmem %s427_s25, 768  ;;  %p429_p0 = scmp.lt.s32.totalorder %s575_s10, %s427_s25 }
  0x1b   : > { %p430_p1 = scmp.lt.s32.totalorder %s428_s26, %s422_s20 }
  0x1d   : > { %p431_p2 = por %p430_p1, %p429_p0 }
  0x1e   : > { %409 = vset.pattern.permute.xlu0 %v487_v2 }
  0x1f   : > { %206 = vperm.xlu0 %409, %v166_v1   ;;  %p432_p3 = pnand %p431_p2, %p425_p13 }
  0x99   : > { %v172_v18 = vpop.permute.xlu0 %171 }
  0x9a   : > { %v202_v27 = vmul.f32 %v193_v19, %v172_v18  ;;  %v203_v28 = vmul.f32 %v197_v20, %v172_v18  ;;  %v204_v32 = vmul.f32 %v201_v22, %v172_v18 }
  0x9e   : > { %v207_v31 = vpop.permute.xlu0 %206 }
  0x9f   : > { %v236_v33 = vmul.f32 %v227_v23, %v207_v31  ;;  %v237_v34 = vmul.f32 %v231_v24, %v207_v31  ;;  %v238_v35 = vmul.f32 %v235_v25, %v207_v31 }
  0xa1   : > { %v239_v36 = vadd.f32 %v236_v33, %v202_v27  ;;  %v240_v37 = vadd.f32 %v237_v34, %v203_v28  ;;  %v241_v38 = vadd.f32 %v238_v35, %v204_v32 }
  0xa3   : > { %v258_v39 = vadd.f32 %v246_v26, %v239_v36  ;;  %v259_v40 = vadd.f32 %v250_v29, %v240_v37  ;;  %v260_v41 = vadd.f32 %v254_v30, %v241_v38 }
  0xa5   : > { %410 = vtanh.f32 %v258_v39 }
  0xa6   : > { %412 = vtanh.f32 %v259_v40 }
  0xa7   : > { %414 = vtanh.f32 %v260_v41 }
  0xaf   : > { %v411_v42 = vpop.eup %410 }
  0xb0   : > { %v413_v43 = vpop.eup %412  ;;  %v264_v44 = vmax.f32 %v411_v42, 0.0 }
  0xb1   : > { %v415_v45 = vpop.eup %414  ;;  %v265_v46 = vmax.f32 %v413_v43, 0.0 }
  0xb2   : > { %v266_v47 = vmax.f32 %v415_v45, 0.0  ;;  %v267_v48 = vmul.f32 0.5, %v264_v44 }
  0xb3   : > { %v268_v49 = vmul.f32 0.5, %v265_v46 }
  0xb4   : > { %v269_v50 = vmul.f32 0.5, %v266_v47  ;;  %416 = vtanh.f32 %v267_v48 }
  0xb5   : > { %418 = vtanh.f32 %v268_v49 }
  0xb6   : > { %420 = vtanh.f32 %v269_v50 }
  0xbe   : > { %v417_v51 = vpop.eup %416 }
  0xbf   : > { %v419_v52 = vpop.eup %418  ;;  %v273_v53 = vadd.f32 1.0, %v417_v51 }
  0xc0   : > { %v421_v54 = vpop.eup %420  ;;  %v274_v55 = vadd.f32 1.0, %v419_v52 }
  0xc1   : > { %v275_v56 = vadd.f32 1.0, %v421_v54  ;;  %v276_v57 = vmul.f32 0.5, %v273_v53 }
  0xc2   : > { %v277_v58 = vmul.f32 0.5, %v274_v55 }
  0xc3   : > { %v278_v59 = vmul.f32 0.5, %v275_v56  ;;  %279 = vst [vmem:[%s161_s9] sm:$0xff] %v276_v57 }
  0xc4   : > { %280 = vst [vmem:[%s161_s9 + $0x8] sm:$0xff] %v277_v58 }
  0xc5   : > { %282 = vst.msk [vmem:[%s161_s9 + $0x10] sm:$0xff] %vm281_vm0, %v278_v59 }
  0xc6   : > { %435 = shalt.err (!%p432_p3)
}
  0xc7   : > { %s436_s27 = scalar_lea.hbm %s573_s19, 384  ;;  %s440_s30 = scalar_lea.hbm %s618_s3, 768 }
  0xc8   : > { %p437_p4 = scmp.ne.s32.totalorder %s573_s19, %s436_s27  ;;  %p441_p9 = scmp.lt.u32.totalorder %s573_s19, %s618_s3 }
  0xc9   : > { %p442_p10 = scmp.lt.u32.totalorder %s440_s30, %s436_s27  ;;  %p444_p12 = scmp.lt.u32.totalorder %s436_s27, %s573_s19 }
  0xca   : > { %p438_p7 = pnand %p437_p4, %p547_p5 }
  0xcb   : > { %p443_p11 = por %p442_p10, %p441_p9 }
  0xcc   : > { %p439_p8 = pneg %p438_p7 }
  0xcd   : > { %p445_p13 = por %p444_p12, %p443_p11 }
  0xcf   : > { %p446_p0 = pnand %p445_p13, %p439_p8 }
  0xd1   : > { %449 = shalt.err (!%p446_p0)
}
  0xd2   : > { %367 = dma.vmem_to_hbm [thread:$0]  (%p547_p5), %s575_s10, 384, %s573_s19, %s284_s16  }
  0xd3 PF: > { %p373_p1 = scmp.ge.s32.totalorder %s484_s15, 2  ;;  %s310_s6 = sand.u32 1, %s472_s12  }
  0xd4   : > { %s311_s7 = scalar_lea.sflag [#allocation3], %s310_s6 }
  0xd5   : > { %p370_p2 = pnand %p373_p1, %p551_p6 }
  0xd7   : > { %467 = dma.done.wait (!%p370_p2), %s311_s7, 384  }
  0xd8   : > { %469 = vsyncadd (!%p370_p2), %s311_s7, 4294966912  ;;  %p13_p3 = scmp.ge.s32.totalorder %s534_s18, 4   ;;  %s621_s12 = smov %s476_s13 }
  0xd9   : > { %s622_s13 = smov %s480_s14  ;;  %s623_s14 = smov %s545_s21 }
  0xda   : > { %s624_s15 = smov %s534_s18  ;;  %15 = sbr.rel (!%p13_p3) target bundleno = 3 (0x3), region = 67 }
  0xe1   :  { %316 = vsyncpa [#allocation3], 1 }
  0xe2   :  { %318 = vsyncpa [#allocation3 + $0x1], 1 }

</bundles_post_ra>
